<compile_context>
chip_gen: v7x
topology: tpu7x:2x2x1
jax: 0.10.0
libtpu: 0.0.40
codegen_flags: <defaults>
</compile_context>

<pallas_src>
import math
import functools

import jax
import jax.numpy as jnp
from jax.experimental import pallas as pl
from jax.experimental.pallas import tpu as pltpu


# ---------------------------------------------------------------------------
# Kernel: one grid step = `bt` batch/head entries x one q tile vs. full K/V.
# ---------------------------------------------------------------------------
def _sdpa_kernel(q_ref, k_ref, v_ref, out_ref, attn_ref, *, inv_temperature):
    q = q_ref[...] * inv_temperature            # (bt, tq, d_k); scale folded into q
    k = k_ref[...]                               # (bt, Lk, d_k)
    v = v_ref[...]                               # (bt, Lk, d_v)

    # scores[b,i,j] = sum_d q[b,i,d] * k[b,j,d]  -- batched contraction over the
    # last (lane) dim of both operands: no transpose in front of the MXU.
    scores = jax.lax.dot_general(
        q, k,
        dimension_numbers=(((2,), (2,)), ((0,), (0,))),
        preferred_element_type=jnp.float32)      # (bt, tq, Lk)

    # Numerically stable softmax over the key dim (torch softmax dim=2).
    m = jnp.max(scores, axis=-1, keepdims=True)
    e = jnp.exp(scores - m)
    denom = jnp.sum(e, axis=-1, keepdims=True)
    probs = e * pl.reciprocal(denom, approx=False)   # (bt, tq, Lk) f32
    # NOTE: multiply-by-reciprocal is ~1 ulp from a true divide; attn stays f32.

    # P @ V on the MXU in bf16 (bf16-native on all generations), f32 accumulate.
    out = jax.lax.dot_general(
        probs.astype(jnp.bfloat16), v.astype(jnp.bfloat16),
        dimension_numbers=(((2,), (1,)), ((0,), (0,))),
        preferred_element_type=jnp.float32)      # (bt, tq, d_v)

    # Output refs may be plain 3-D blocks or lane-dense flattened slabs; the
    # reshape to the ref's static shape covers both layouts (no-op for 3-D).
    attn_ref[...] = probs.reshape(attn_ref.shape).astype(attn_ref.dtype)
    out_ref[...] = out.reshape(out_ref.shape).astype(out_ref.dtype)


# ---------------------------------------------------------------------------
# Footprint-aware tile selection.
# ---------------------------------------------------------------------------
def _vmem_capacity_bytes():
    try:
        return int(pltpu.get_tpu_info().vmem_capacity_bytes)
    except Exception:
        return 64 * 1024 * 1024          # conservative: v7x physical VMEM


def _divisors_desc(n):
    return [d for d in range(n, 0, -1) if n % d == 0]


def _block_bytes(bt, tq, Lk, d_k, d_v):
    """f32 footprint of one grid step's blocks, double-buffered."""
    elems = bt * (tq * d_k + Lk * d_k + Lk * d_v + tq * d_v + tq * Lk)
    return 2 * 4 * elems


def _choose_tiles(B, Lq, Lk, d_k, d_v, budget):
    # q-tile candidates: large sublane-aligned tiles dividing Lq, plus full Lq
    # (a full-extent block is always legal).
    cands = {c for c in (2048, 1024, 512, 256, 128) if Lq % c == 0}
    cands |= {c for c in _divisors_desc(Lq) if c % 8 == 0}
    cands.add(Lq)
    cands = sorted(cands, reverse=True)

    tq = None
    for c in cands:
        if _block_bytes(1, c, Lk, d_k, d_v) <= budget:
            tq = c
            break
    if tq is None:
        # TODO(synk): tile Lk (online softmax, "arbitrary" axis) for very long
        # sequences; until then fall back to the smallest q tile.
        tq = cands[-1]

    bt = 1
    for d in _divisors_desc(B):
        if _block_bytes(d, tq, Lk, d_k, d_v) <= budget:
            bt = d
            break
    return bt, tq


# ---------------------------------------------------------------------------
# Wrapper
# ---------------------------------------------------------------------------
def scaled_dot_product_attention(q, k, v, temperature, mask=None,
                                 *, block_b=None, block_q=None):
    """q: (B, Lq, d_k), k: (B, Lk, d_k), v: (B, Lk, d_v).

    Returns (output (B, Lq, d_v), attn (B, Lq, Lk)) like the torch module.
    """
    if mask is not None:
        # TODO(synk): masked_fill(mask, -inf) before softmax is not kernelized.
        raise NotImplementedError("mask is not supported by the Pallas kernel")

    q = jnp.asarray(q, jnp.float32)
    k = jnp.asarray(k, jnp.float32)
    v = jnp.asarray(v, jnp.float32)

    B, Lq, d_k = q.shape
    Bk, Lk, d_k2 = k.shape
    Bv, Lkv, d_v = v.shape
    assert B == Bk == Bv and d_k == d_k2 and Lk == Lkv

    vmem_cap = _vmem_capacity_bytes()
    # ~45% of physical VMEM for the blocks: ~28 MiB on v7x (64 MiB physical),
    # ~57 MiB on v5e/v6e (128 MiB) -- per generation, not a hard-coded clamp.
    budget = int(0.45 * vmem_cap)

    bt, tq = _choose_tiles(B, Lq, Lk, d_k, d_v, budget)
    if block_b is not None:
        assert B % int(block_b) == 0
        bt = int(block_b)
    if block_q is not None:
        assert Lq % int(block_q) == 0
        tq = int(block_q)

    inv_temperature = float(1.0 / float(temperature))
    kernel = functools.partial(_sdpa_kernel, inv_temperature=inv_temperature)

    # Advisory cost for XLA's scheduler around the custom call.
    flops = 2 * B * Lq * Lk * (d_k + d_v)
    transcendentals = B * Lq * Lk
    bytes_accessed = 4 * (B * Lq * d_k + B * Lk * d_k + B * Lk * d_v
                          + B * Lq * d_v + B * Lq * Lk)
    cost = pl.CostEstimate(flops=flops, transcendentals=transcendentals,
                           bytes_accessed=bytes_accessed)

    footprint = _block_bytes(bt, tq, Lk, d_k, d_v)
    vmem_limit = int(min(max(footprint + (4 << 20), 32 << 20),
                         int(0.9 * vmem_cap)))

    def general_call():
        # Plain 3-D output blocks; lane-dense whenever Lk / d_v >= 128.
        return pl.pallas_call(
            kernel,
            out_shape=(
                jax.ShapeDtypeStruct((B, Lq, d_v), jnp.float32),
                jax.ShapeDtypeStruct((B, Lq, Lk), jnp.float32),
            ),
            grid_spec=pltpu.PrefetchScalarGridSpec(
                num_scalar_prefetch=0,
                grid=(B // bt, Lq // tq),
                in_specs=[
                    pl.BlockSpec((bt, tq, d_k), lambda b, i: (b, i, 0)),   # q tile
                    pl.BlockSpec((bt, Lk, d_k), lambda b, i: (b, 0, 0)),   # full K
                    pl.BlockSpec((bt, Lk, d_v), lambda b, i: (b, 0, 0)),   # full V
                ],
                out_specs=[
                    pl.BlockSpec((bt, tq, d_v), lambda b, i: (b, i, 0)),   # output
                    pl.BlockSpec((bt, tq, Lk), lambda b, i: (b, i, 0)),    # attn
                ],
            ),
            compiler_params=pltpu.CompilerParams(
                dimension_semantics=("parallel", "parallel"),
                vmem_limit_bytes=vmem_limit,
            ),
            cost_estimate=cost,
        )(q, k, v)

    # Fused lane-dense path: whole per-head problem in one block, outputs stored
    # as flat slabs whose last dim folds (bt, Lq, {d_v,Lk}) -> multiple of 128.
    fuse = (tq == Lq
            and (Lk % 128 != 0 or d_v % 128 != 0)
            and bt * Lq * max(Lk, d_v) <= 32768)
    if fuse:
        try:
            out_flat, attn_flat = pl.pallas_call(
                kernel,
                out_shape=(
                    jax.ShapeDtypeStruct((B // bt, 1, bt * Lq * d_v), jnp.float32),
                    jax.ShapeDtypeStruct((B // bt, 1, bt * Lq * Lk), jnp.float32),
                ),
                grid_spec=pltpu.PrefetchScalarGridSpec(
                    num_scalar_prefetch=0,
                    grid=(B // bt,),
                    in_specs=[
                        pl.BlockSpec((bt, Lq, d_k), lambda b: (b, 0, 0)),
                        pl.BlockSpec((bt, Lk, d_k), lambda b: (b, 0, 0)),
                        pl.BlockSpec((bt, Lk, d_v), lambda b: (b, 0, 0)),
                    ],
                    out_specs=[
                        pl.BlockSpec((1, 1, bt * Lq * d_v), lambda b: (b, 0, 0)),
                        pl.BlockSpec((1, 1, bt * Lq * Lk), lambda b: (b, 0, 0)),
                    ],
                ),
                compiler_params=pltpu.CompilerParams(
                    dimension_semantics=("parallel",),
                    vmem_limit_bytes=vmem_limit,
                ),
                cost_estimate=cost,
            )(q, k, v)
            jax.block_until_ready((out_flat, attn_flat))
            # Contiguous reshapes back to the module's shapes (layout plumbing).
            return (out_flat.reshape(B, Lq, d_v), attn_flat.reshape(B, Lq, Lk))
        except Exception:
            # If the in-kernel flatten cannot be lowered on this jax/Mosaic
            # version, fall back to the plain 3-D layout (still correct).
            pass
    return general_call()


# ---------------------------------------------------------------------------
# Pure-JAX reference (mirrors the PyTorch forward, mask=None)
# ---------------------------------------------------------------------------
def sdpa_reference(q, k, v, temperature):
    attn = jnp.einsum("bqd,bkd->bqk", q, k) / temperature
    attn = jax.nn.softmax(attn, axis=2)
    output = jnp.einsum("bqk,bkd->bqd", attn, v)
    return output, attn


if __name__ == "__main__":
    key = jax.random.PRNGKey(0)
    k1, k2, k3, k4, k5, k6 = jax.random.split(key, 6)

    # Case 1: the module's actual regime inside fftBlock's multi-head attention:
    # q/k/v shaped (n_head * batch, seq, d_k) -> (2*2, 8, 32).  Fused path.
    B, L, d_k, d_v = 4, 8, 32, 32
    temperature = math.sqrt(d_k)
    q = jax.random.normal(k1, (B, L, d_k), jnp.float32)
    k = jax.random.normal(k2, (B, L, d_k), jnp.float32)
    v = jax.random.normal(k3, (B, L, d_v), jnp.float32)

    out, attn = scaled_dot_product_attention(q, k, v, temperature)
    jax.block_until_ready((out, attn))
    out_gold, attn_gold = sdpa_reference(q, k, v, temperature)
    assert out.shape == (B, L, d_v) and attn.shape == (B, L, L)
    assert jnp.allclose(attn, attn_gold, atol=1e-5, rtol=1e-5), "attn mismatch (1)"
    # output tolerance is bf16-P@V-limited (standard flash-attention trick).
    assert jnp.allclose(out, out_gold, atol=3e-2, rtol=3e-2), "output mismatch (1)"

    # Case 2: larger shapes through the general path with a real multi-step grid.
    B2, L2, d2 = 4, 128, 64
    q2 = jax.random.normal(k4, (B2, L2, d2), jnp.float32)
    kk2 = jax.random.normal(k5, (B2, L2, d2), jnp.float32)
    v2 = jax.random.normal(k6, (B2, L2, d2), jnp.float32)
    out2, attn2 = scaled_dot_product_attention(q2, kk2, v2, math.sqrt(d2),
                                               block_b=2, block_q=64)
    jax.block_until_ready((out2, attn2))
    out2_gold, attn2_gold = sdpa_reference(q2, kk2, v2, math.sqrt(d2))
    assert out2.shape == (B2, L2, d2) and attn2.shape == (B2, L2, L2)
    assert jnp.allclose(attn2, attn2_gold, atol=1e-5, rtol=1e-5), "attn mismatch (2)"
    assert jnp.allclose(out2, out2_gold, atol=3e-2, rtol=3e-2), "output mismatch (2)"

    print("KERNEL_OK")
</pallas_src>

<mosaic_0001>
module attributes {stable_mosaic.version = 11 : i64} {
  func.func @_sdpa_kernel(%arg0: i32, %arg1: memref<4x8x32xf32, #tpu.memory_space<vmem>>, %arg2: memref<4x8x32xf32, #tpu.memory_space<vmem>>, %arg3: memref<4x8x32xf32, #tpu.memory_space<vmem>>, %arg4: memref<1x1x1024xf32, #tpu.memory_space<vmem>>, %arg5: memref<1x1x256xf32, #tpu.memory_space<vmem>>) attributes {dimension_semantics = [#tpu.dimension_semantics<parallel>], iteration_bounds = array<i64: 1>, scalar_prefetch = 0 : i64, scratch_operands = 0 : i64, tpu.core_type = #tpu.core_type<tc>, window_params = [{transform_indices = @transform_0, window_bounds = array<i64: 4, 8, 32>}, {transform_indices = @transform_1, window_bounds = array<i64: 4, 8, 32>}, {transform_indices = @transform_2, window_bounds = array<i64: 4, 8, 32>}, {transform_indices = @transform_3, window_bounds = array<i64: 1, 1, 1024>}, {transform_indices = @transform_4, window_bounds = array<i64: 1, 1, 256>}]} {
    %c0 = arith.constant 0 : index
    %c0_0 = arith.constant 0 : index
    %c0_1 = arith.constant 0 : index
    %0 = vector.load %arg1[%c0, %c0_0, %c0_1] : memref<4x8x32xf32, #tpu.memory_space<vmem>>, vector<4x8x32xf32>
    %cst = arith.constant 0.176776692 : f32
    %1 = vector.broadcast %cst : f32 to vector<4x8x32xf32>
    %2 = arith.mulf %0, %1 : vector<4x8x32xf32>
    %c0_2 = arith.constant 0 : index
    %c0_3 = arith.constant 0 : index
    %c0_4 = arith.constant 0 : index
    %3 = vector.load %arg2[%c0_2, %c0_3, %c0_4] : memref<4x8x32xf32, #tpu.memory_space<vmem>>, vector<4x8x32xf32>
    %c0_5 = arith.constant 0 : index
    %c0_6 = arith.constant 0 : index
    %c0_7 = arith.constant 0 : index
    %4 = vector.load %arg3[%c0_5, %c0_6, %c0_7] : memref<4x8x32xf32, #tpu.memory_space<vmem>>, vector<4x8x32xf32>
    %cst_8 = arith.constant dense<0.000000e+00> : vector<4x8x8xf32>
    %5 = tpu.matmul %2, %3, %cst_8 {dimension_numbers = #tpu.dot_dimension_numbers<[2], [2], [1], [1], [0, 0, 0, 1, 1, 1], [0], [0]>} : vector<4x8x32xf32>, vector<4x8x32xf32>, vector<4x8x8xf32> -> vector<4x8x8xf32>
    %cst_9 = arith.constant dense<0xFF800000> : vector<4x8xf32>
    %6 = vector.multi_reduction <maximumf>, %5, %cst_9 [2] : vector<4x8x8xf32> to vector<4x8xf32>
    %7 = vector.shape_cast %6 : vector<4x8xf32> to vector<4x8x1xf32>
    %8 = vector.broadcast %7 : vector<4x8x1xf32> to vector<4x8x8xf32>
    %9 = arith.subf %5, %8 : vector<4x8x8xf32>
    %10 = math.exp %9 : vector<4x8x8xf32>
    %cst_10 = arith.constant dense<0.000000e+00> : vector<4x8xf32>
    %11 = vector.multi_reduction <add>, %10, %cst_10 [2] : vector<4x8x8xf32> to vector<4x8xf32>
    %12 = vector.shape_cast %11 : vector<4x8xf32> to vector<4x8x1xf32>
    %13 = tpu.reciprocal %12 : vector<4x8x1xf32> -> vector<4x8x1xf32>
    %14 = vector.broadcast %13 : vector<4x8x1xf32> to vector<4x8x8xf32>
    %15 = arith.mulf %10, %14 : vector<4x8x8xf32>
    %16 = arith.truncf %15 : vector<4x8x8xf32> to vector<4x8x8xbf16>
    %17 = arith.truncf %4 : vector<4x8x32xf32> to vector<4x8x32xbf16>
    %cst_11 = arith.constant dense<0.000000e+00> : vector<4x8x32xf32>
    %18 = tpu.matmul %16, %17, %cst_11 {dimension_numbers = #tpu.dot_dimension_numbers<[2], [1], [1], [2], [0, 0, 0, 1, 1, 2], [0], [0]>} : vector<4x8x8xbf16>, vector<4x8x32xbf16>, vector<4x8x32xf32> -> vector<4x8x32xf32>
    %19 = vector.shape_cast %15 : vector<4x8x8xf32> to vector<1x1x256xf32>
    %c0_12 = arith.constant 0 : index
    %c0_13 = arith.constant 0 : index
    %c0_14 = arith.constant 0 : index
    %20 = vector.load %arg5[%c0_12, %c0_13, %c0_14] : memref<1x1x256xf32, #tpu.memory_space<vmem>>, vector<1x1x256xf32>
    tpu.vector_store %arg5[%c0_12, %c0_13, %c0_14], %19 {strides = array<i32>} : memref<1x1x256xf32, #tpu.memory_space<vmem>>, vector<1x1x256xf32>,
    %21 = vector.shape_cast %18 : vector<4x8x32xf32> to vector<1x1x1024xf32>
    %c0_15 = arith.constant 0 : index
    %c0_16 = arith.constant 0 : index
    %c0_17 = arith.constant 0 : index
    %22 = vector.load %arg4[%c0_15, %c0_16, %c0_17] : memref<1x1x1024xf32, #tpu.memory_space<vmem>>, vector<1x1x1024xf32>
    tpu.vector_store %arg4[%c0_15, %c0_16, %c0_17], %21 {strides = array<i32>} : memref<1x1x1024xf32, #tpu.memory_space<vmem>>, vector<1x1x1024xf32>,
    return
  }
  func.func @transform_0(%arg0: i32) -> (i32, i32, i32) {
    %c0_i32 = arith.constant 0 : i32
    %c0_i32_0 = arith.constant 0 : i32
    %c0_i32_1 = arith.constant 0 : i32
    return %arg0, %c0_i32, %c0_i32_0 : i32, i32, i32
  }
  func.func @transform_1(%arg0: i32) -> (i32, i32, i32) {
    %c0_i32 = arith.constant 0 : i32
    %c0_i32_0 = arith.constant 0 : i32
    %c0_i32_1 = arith.constant 0 : i32
    return %arg0, %c0_i32, %c0_i32_0 : i32, i32, i32
  }
  func.func @transform_2(%arg0: i32) -> (i32, i32, i32) {
    %c0_i32 = arith.constant 0 : i32
    %c0_i32_0 = arith.constant 0 : i32
    %c0_i32_1 = arith.constant 0 : i32
    return %arg0, %c0_i32, %c0_i32_0 : i32, i32, i32
  }
  func.func @transform_3(%arg0: i32) -> (i32, i32, i32) {
    %c0_i32 = arith.constant 0 : i32
    %c0_i32_0 = arith.constant 0 : i32
    %c0_i32_1 = arith.constant 0 : i32
    return %arg0, %c0_i32, %c0_i32_0 : i32, i32, i32
  }
  func.func @transform_4(%arg0: i32) -> (i32, i32, i32) {
    %c0_i32 = arith.constant 0 : i32
    %c0_i32_0 = arith.constant 0 : i32
    %c0_i32_1 = arith.constant 0 : i32
    return %arg0, %c0_i32, %c0_i32_0 : i32, i32, i32
  }
}

module attributes {stable_mosaic.version = 11 : i64} {
  func.func @_sdpa_kernel(%arg0: i32, %arg1: i32, %arg2: memref<4x8x32xf32, #tpu.memory_space<vmem>>, %arg3: memref<4x8x32xf32, #tpu.memory_space<vmem>>, %arg4: memref<4x8x32xf32, #tpu.memory_space<vmem>>, %arg5: memref<4x8x32xf32, #tpu.memory_space<vmem>>, %arg6: memref<4x8x8xf32, #tpu.memory_space<vmem>>) attributes {dimension_semantics = [#tpu.dimension_semantics<parallel>, #tpu.dimension_semantics<parallel>], iteration_bounds = array<i64: 1, 1>, scalar_prefetch = 0 : i64, scratch_operands = 0 : i64, tpu.core_type = #tpu.core_type<tc>, window_params = [{transform_indices = @transform_0, window_bounds = array<i64: 4, 8, 32>}, {transform_indices = @transform_1, window_bounds = array<i64: 4, 8, 32>}, {transform_indices = @transform_2, window_bounds = array<i64: 4, 8, 32>}, {transform_indices = @transform_3, window_bounds = array<i64: 4, 8, 32>}, {transform_indices = @transform_4, window_bounds = array<i64: 4, 8, 8>}]} {
    %c0 = arith.constant 0 : index
    %c0_0 = arith.constant 0 : index
    %c0_1 = arith.constant 0 : index
    %0 = vector.load %arg2[%c0, %c0_0, %c0_1] : memref<4x8x32xf32, #tpu.memory_space<vmem>>, vector<4x8x32xf32>
    %cst = arith.constant 0.176776692 : f32
    %1 = vector.broadcast %cst : f32 to vector<4x8x32xf32>
    %2 = arith.mulf %0, %1 : vector<4x8x32xf32>
    %c0_2 = arith.constant 0 : index
    %c0_3 = arith.constant 0 : index
    %c0_4 = arith.constant 0 : index
    %3 = vector.load %arg3[%c0_2, %c0_3, %c0_4] : memref<4x8x32xf32, #tpu.memory_space<vmem>>, vector<4x8x32xf32>
    %c0_5 = arith.constant 0 : index
    %c0_6 = arith.constant 0 : index
    %c0_7 = arith.constant 0 : index
    %4 = vector.load %arg4[%c0_5, %c0_6, %c0_7] : memref<4x8x32xf32, #tpu.memory_space<vmem>>, vector<4x8x32xf32>
    %cst_8 = arith.constant dense<0.000000e+00> : vector<4x8x8xf32>
    %5 = tpu.matmul %2, %3, %cst_8 {dimension_numbers = #tpu.dot_dimension_numbers<[2], [2], [1], [1], [0, 0, 0, 1, 1, 1], [0], [0]>} : vector<4x8x32xf32>, vector<4x8x32xf32>, vector<4x8x8xf32> -> vector<4x8x8xf32>
    %cst_9 = arith.constant dense<0xFF800000> : vector<4x8xf32>
    %6 = vector.multi_reduction <maximumf>, %5, %cst_9 [2] : vector<4x8x8xf32> to vector<4x8xf32>
    %7 = vector.shape_cast %6 : vector<4x8xf32> to vector<4x8x1xf32>
    %8 = vector.broadcast %7 : vector<4x8x1xf32> to vector<4x8x8xf32>
    %9 = arith.subf %5, %8 : vector<4x8x8xf32>
    %10 = math.exp %9 : vector<4x8x8xf32>
    %cst_10 = arith.constant dense<0.000000e+00> : vector<4x8xf32>
    %11 = vector.multi_reduction <add>, %10, %cst_10 [2] : vector<4x8x8xf32> to vector<4x8xf32>
    %12 = vector.shape_cast %11 : vector<4x8xf32> to vector<4x8x1xf32>
    %13 = tpu.reciprocal %12 : vector<4x8x1xf32> -> vector<4x8x1xf32>
    %14 = vector.broadcast %13 : vector<4x8x1xf32> to vector<4x8x8xf32>
    %15 = arith.mulf %10, %14 : vector<4x8x8xf32>
    %16 = arith.truncf %15 : vector<4x8x8xf32> to vector<4x8x8xbf16>
    %17 = arith.truncf %4 : vector<4x8x32xf32> to vector<4x8x32xbf16>
    %cst_11 = arith.constant dense<0.000000e+00> : vector<4x8x32xf32>
    %18 = tpu.matmul %16, %17, %cst_11 {dimension_numbers = #tpu.dot_dimension_numbers<[2], [1], [1], [2], [0, 0, 0, 1, 1, 2], [0], [0]>} : vector<4x8x8xbf16>, vector<4x8x32xbf16>, vector<4x8x32xf32> -> vector<4x8x32xf32>
    %c0_12 = arith.constant 0 : index
    %c0_13 = arith.constant 0 : index
    %c0_14 = arith.constant 0 : index
    %19 = vector.load %arg6[%c0_12, %c0_13, %c0_14] : memref<4x8x8xf32, #tpu.memory_space<vmem>>, vector<4x8x8xf32>
    tpu.vector_store %arg6[%c0_12, %c0_13, %c0_14], %15 {strides = array<i32>} : memref<4x8x8xf32, #tpu.memory_space<vmem>>, vector<4x8x8xf32>,
    %c0_15 = arith.constant 0 : index
    %c0_16 = arith.constant 0 : index
    %c0_17 = arith.constant 0 : index
    %20 = vector.load %arg5[%c0_15, %c0_16, %c0_17] : memref<4x8x32xf32, #tpu.memory_space<vmem>>, vector<4x8x32xf32>
    tpu.vector_store %arg5[%c0_15, %c0_16, %c0_17], %18 {strides = array<i32>} : memref<4x8x32xf32, #tpu.memory_space<vmem>>, vector<4x8x32xf32>,
    return
  }
  func.func @transform_0(%arg0: i32, %arg1: i32) -> (i32, i32, i32) {
    %c0_i32 = arith.constant 0 : i32
    %c0_i32_0 = arith.constant 0 : i32
    return %arg0, %arg1, %c0_i32 : i32, i32, i32
  }
  func.func @transform_1(%arg0: i32, %arg1: i32) -> (i32, i32, i32) {
    %c0_i32 = arith.constant 0 : i32
    %c0_i32_0 = arith.constant 0 : i32
    %c0_i32_1 = arith.constant 0 : i32
    return %arg0, %c0_i32, %c0_i32_0 : i32, i32, i32
  }
  func.func @transform_2(%arg0: i32, %arg1: i32) -> (i32, i32, i32) {
    %c0_i32 = arith.constant 0 : i32
    %c0_i32_0 = arith.constant 0 : i32
    %c0_i32_1 = arith.constant 0 : i32
    return %arg0, %c0_i32, %c0_i32_0 : i32, i32, i32
  }
  func.func @transform_3(%arg0: i32, %arg1: i32) -> (i32, i32, i32) {
    %c0_i32 = arith.constant 0 : i32
    %c0_i32_0 = arith.constant 0 : i32
    return %arg0, %arg1, %c0_i32 : i32, i32, i32
  }
  func.func @transform_4(%arg0: i32, %arg1: i32) -> (i32, i32, i32) {
    %c0_i32 = arith.constant 0 : i32
    %c0_i32_0 = arith.constant 0 : i32
    return %arg0, %arg1, %c0_i32 : i32, i32, i32
  }
}

</mosaic_0001>

<bundles_post_ra>
// kernel: tpu_custom_call.1
= control target key start
LH: loop header
LB: loop body
LE: loop exit
PB: predicated region body
PF: predicated region fallthrough
CT: control target
= control target key end

     0   :  { %10 = vsyncpa [#allocation3], 0  ;;  %s1048_s0 = inlined_call_operand.hbm [shape: f32[4,8,32], index: 0, kind: input, shape index: {}]   ;;  %s1049_s1 = inlined_call_operand.hbm [shape: f32[4,8,32], index: 1, kind: input, shape index: {}]   ;;  %s1050_s2 = inlined_call_operand.hbm [shape: f32[4,8,32], index: 2, kind: input, shape index: {}]   ;;  %s1051_s3 = inlined_call_operand.hbm [shape: f32[4,8,32], index: 3, kind: output, shape index: {0}]   ;;  %s1052_s4 = inlined_call_operand.hbm [shape: f32[4,8,8], index: 4, kind: output, shape index: {1}]  }
   0x1   :  { %11 = vsyncpa [#allocation6], 0 }
   0x2   :  { %12 = vsyncpa [#allocation4], 0 }
   0x3   :  { %13 = vsyncpa [#allocation10], 0  ;;  %s876_s15 = smov [#allocation5]   ;;  %s877_s17 = smov [#allocation2]  }
   0x4   :  { %s31_s16 = sshll.u32 %s876_s15, 4  ;;  %s19_s18 = sshll.u32 %s877_s17, 4  ;;  %s32_s16 = int_to_ptr.vmem [resolvable:$true] %s31_s16  ;;  %s910_s18 = int_to_ptr.vmem [resolvable:$true] %s19_s18 }
   0x5   :  { %s758_s21 = scalar_lea.hbm %s1049_s1, 512 }
   0x6   :  { %p759_p0 = scmp.ne.s32.totalorder %s1049_s1, %s758_s21  ;;  %p762_p1 = scmp.lt.u32.totalorder %s758_s21, %s1049_s1 }
   0x8   :  { %p764_p2 = pnand %p762_p1, %p759_p0 }
   0xa   :  { %767 = shalt.err (!%p764_p2)
}
   0xb   :  { %s768_s26 = scalar_lea.vmem %s32_s16, 512  ;;  %p773_p4 = scmp.lt.s32.totalorder %s32_s16, %s32_s16 }
   0xc   :  { %p769_p3 = scmp.ne.s32.totalorder %s32_s16, %s768_s26  ;;  %p774_p5 = scmp.lt.s32.totalorder %s768_s26, %s768_s26 }
   0xe   :  { %p775_p6 = por %p774_p5, %p773_p4 }
  0x10   :  { %p776_p7 = pnand %p775_p6, %p769_p3 }
  0x12   :  { %779 = shalt.err (!%p776_p7)
}
  0x13   :  { %s878_s27 = smov 128   ;;  %s879_s28 = smov 8  }
  0x14   :  { %37 = dma.hbm_to_vmem [thread:$0]  %s1049_s1, 512, %s32_s16, [#allocation6], %s878_s27, %s878_s27, %s879_s28  }
  0x15   :  { %s780_s7 = scalar_lea.hbm %s1048_s0, 512 }
  0x16   :  { %p781_p8 = scmp.ne.s32.totalorder %s1048_s0, %s780_s7  ;;  %p784_p9 = scmp.lt.u32.totalorder %s780_s7, %s1048_s0 }
  0x18   :  { %p786_p10 = pnand %p784_p9, %p781_p8 }
  0x1a   :  { %789 = shalt.err (!%p786_p10)
}
  0x1b   :  { %s790_s12 = scalar_lea.vmem %s910_s18, 512  ;;  %p795_p12 = scmp.lt.s32.totalorder %s910_s18, %s910_s18 }
  0x1c   :  { %p791_p11 = scmp.ne.s32.totalorder %s910_s18, %s790_s12  ;;  %p796_p13 = scmp.lt.s32.totalorder %s790_s12, %s790_s12 }
  0x1e   :  { %p797_p0 = por %p796_p13, %p795_p12 }
  0x20   :  { %p798_p1 = pnand %p797_p0, %p791_p11 }
  0x22   :  { %801 = shalt.err (!%p798_p1)
}
  0x23   :  { %25 = dma.hbm_to_vmem [thread:$0]  %s1048_s0, 512, %s910_s18, [#allocation3], %s878_s27, %s878_s27, %s879_s28  }
  0x24   :  { %s880_s14 = smov [#allocation7]   ;;  %s802_s19 = scalar_lea.hbm %s1050_s2, 512 }
  0x25   :  { %s43_s15 = sshll.u32 %s880_s14, 4  ;;  %p803_p2 = scmp.ne.s32.totalorder %s1050_s2, %s802_s19  ;;  %s44_s15 = int_to_ptr.vmem [resolvable:$true] %s43_s15 }
  0x26   :  { %p806_p3 = scmp.lt.u32.totalorder %s802_s19, %s1050_s2 }
  0x28   :  { %p808_p4 = pnand %p806_p3, %p803_p2 }
  0x2a   :  { %811 = shalt.err (!%p808_p4)
}
  0x2b   :  { %s812_s24 = scalar_lea.vmem %s44_s15, 512  ;;  %p817_p6 = scmp.lt.s32.totalorder %s44_s15, %s44_s15 }
  0x2c   :  { %p813_p5 = scmp.ne.s32.totalorder %s44_s15, %s812_s24  ;;  %p818_p7 = scmp.lt.s32.totalorder %s812_s24, %s812_s24 }
  0x2e   :  { %p819_p8 = por %p818_p7, %p817_p6 }
  0x30   :  { %p820_p9 = pnand %p819_p8, %p813_p5 }
  0x32   :  { %823 = shalt.err (!%p820_p9)
}
  0x33   :  { %49 = dma.hbm_to_vmem [thread:$0]  %s1050_s2, 512, %s44_s15, [#allocation6], %s878_s27, %s878_s27, %s879_s28  }
  0x34   :  { %868 = dma.done.wait [#allocation3], 512  }
  0x35   :  { %869 = vsyncadd [#allocation3], 4294966784 }
  0x36   :  { %870 = dma.done.wait [#allocation6], 1024  }
  0x37   :  { %871 = vsyncadd [#allocation6], 4294966272  ;;  %v881_v0 = vmov 0.0   ;;  %vm882_vm0 = vmmov 0   ;;  %vm76_vm1 = vcmask 261120   ;;  %v68_v1 = vld [vmem:[#allocation5] sm:$0xff] }
  0x38   :  { %689 = vmatprep.subr.mxu0 %v881_v0  ;;  %691 = vmatprep.mubr.msk.f32.mxu0 %vm882_vm0, %v881_v0  ;;  %v60_v2 = vld [vmem:[#allocation2] sm:$0xff]  ;;  %v69_v3 = vld [vmem:[#allocation5 + $0x8] sm:$0xff]  ;;  %v62_v6 = vld [vmem:[#allocation2 + $0x10] sm:$0xff]  ;;  %vm381_vm2 = vcmask 64512   ;;  %vm437_vm3 = vcmask 1043456   ;;  %s883_s2 = smov [#allocation9]  }
  0x39   :  { %694 = vmatprep.subr.mxu1 %v881_v0  ;;  %696 = vmatprep.mubr.msk.f32.mxu1 %vm882_vm0, %v881_v0  ;;  %v64_v4 = vmul.f32 0.17677669, %v60_v2  ;;  %v61_v5 = vld [vmem:[#allocation2 + $0x8] sm:$0xff]  ;;  %v70_v7 = vld [vmem:[#allocation5 + $0x10] sm:$0xff]  ;;  %v63_v9 = vld [vmem:[#allocation2 + $0x18] sm:$0xff]  ;;  %s644_s25 = sshll.u32 %s883_s2, 4  ;;  %s645_s25 = int_to_ptr.vmem [resolvable:$true] %s644_s25 }
  0x3a   :  { %690 = vmatpush3.xpose.msk.msra.mxu0 %vm76_vm1, %v68_v1  ;;  %695 = vmatpush3.xpose.msk.msra.mxu1 %vm76_vm1, %v69_v3  ;;  %v65_v8 = vmul.f32 0.17677669, %v61_v5  ;;  %v71_v10 = vld [vmem:[#allocation5 + $0x18] sm:$0xff]  ;;  %v66_v11 = vmul.f32 0.17677669, %v62_v6  ;;  %v72_v45 = vld [vmem:[#allocation7] sm:$0xff]  ;;  %p829_p11 = scmp.lt.s32.totalorder %s645_s25, %s645_s25 }
  0x3b   :  { %699 = vmatprep.subr.mxu0 %v881_v0  ;;  %704 = vmatprep.subr.mxu1 %v881_v0  ;;  %v67_v12 = vmul.f32 0.17677669, %v63_v9  ;;  %v430_v46 = vpack.c.bf16 %v72_v45, %v72_v45  ;;  %v73_v48 = vld [vmem:[#allocation7 + $0x8] sm:$0xff]  ;;  %v74_v54 = vld [vmem:[#allocation7 + $0x10] sm:$0xff]  ;;  %v75_v58 = vld [vmem:[#allocation7 + $0x18] sm:$0xff]  ;;  %s824_s26 = scalar_lea.vmem %s645_s25, 512 }
  0x3c   :  { %v431_v49 = vpack.c.bf16 %v73_v48, %v73_v48  ;;  %v432_v56 = vpack.c.bf16 %v74_v54, %v74_v54  ;;  %v433_v62 = vpack.c.bf16 %v75_v58, %v75_v58  ;;  %p825_p10 = scmp.ne.s32.totalorder %s645_s25, %s824_s26  ;;  %p830_p12 = scmp.lt.s32.totalorder %s824_s26, %s824_s26 }
  0x3d   :  { %692 = vmatmul.mubr.msk.f32.vlgmr.msra.gmra.mrb[0].mxu0 %vm76_vm1, %v64_v4  ;;  %697 = vmatmul.mubr.msk.f32.vlgmr.msra.gmra.mrb[0].mxu1 %vm76_vm1, %v65_v8  ;;  %v439_v47 = vsel %vm437_vm3, %v430_v46, 0 }
  0x3e   :  { %700 = vmatpush3.xpose.msk.msra.mxu0 %vm76_vm1, %v70_v7  ;;  %701 = vmatprep.mubr.msk.f32.mxu0 %vm882_vm0, %v881_v0  ;;  %v485_v50 = vsel %vm437_vm3, %v431_v49, 0  ;;  %v531_v61 = vsel %vm437_vm3, %v432_v56, 0  ;;  %v577_v5 = vsel %vm437_vm3, %v433_v62, 0  ;;  %p831_p13 = por %p830_p12, %p829_p11 }
  0x3f   :  { %705 = vmatpush3.xpose.msk.msra.mxu1 %vm76_vm1, %v71_v10  ;;  %706 = vmatprep.mubr.msk.f32.mxu1 %vm882_vm0, %v881_v0 }
  0x40   :  { %709 = vmatprep.subr.bf16.mxu0 %v881_v0  ;;  %715 = vmatprep.subr.bf16.mxu1 %v881_v0  ;;  %p832_p0 = pnand %p831_p13, %p825_p10 }
  0x41   :  { %702 = vmatmul.mubr.msk.f32.vlgmr.msra.gmra.mrb[2].mxu0 %vm76_vm1, %v66_v11 }
  0x42   :  { %707 = vmatmul.mubr.msk.f32.vlgmr.msra.gmra.mrb[2].mxu1 %vm76_vm1, %v67_v12  ;;  %711 = vmatprep.mubr.msk.bf16.mxu0 %vm882_vm0, %v881_v0 }
  0x43   :  { %717 = vmatprep.mubr.msk.bf16.mxu1 %vm882_vm0, %v881_v0  ;;  %710 = vmatpush3.bf16.msra.mxu0 %v439_v47 }
  0x44   :  { %721 = vmatprep.subr.bf16.mxu0 %v881_v0  ;;  %716 = vmatpush3.bf16.msra.mxu1 %v485_v50 }
  0x45   :  { %727 = vmatprep.subr.bf16.mxu1 %v881_v0 }
 0x110   :  { %v149_v13 = vpop.f32.mrb[0].mxu0  ;;  %v225_v14 = vpop.f32.mrb[0].mxu1 }
 0x111   :  { %v693_v15 = vpop.f32.mrb[1].mxu0  ;;  %v382_v16 = vsel %vm381_vm2, %v149_v13, -inf  ;;  %v698_v17 = vpop.f32.mrb[1].mxu1  ;;  %v385_v18 = vsel %vm381_vm2, %v225_v14, -inf }
 0x112   :  { %383 = vmax.xlane.f32.xlu0 %v382_v16 }
 0x114   :  { %v301_v19 = vpop.f32.mrb[2].mxu0 }
 0x115   :  { %v388_v20 = vsel %vm381_vm2, %v301_v19, -inf  ;;  %v703_v21 = vpop.f32.mrb[3].mxu0  ;;  %v377_v22 = vpop.f32.mrb[2].mxu1 }
 0x116   :  { %386 = vmax.xlane.f32.xlu0 %v385_v18  ;;  %389 = vmax.xlane.f32.xlu1 %v388_v20  ;;  %v708_v23 = vpop.f32.mrb[3].mxu1  ;;  %v391_v24 = vsel %vm381_vm2, %v377_v22, -inf }
 0x11a   :  { %392 = vmax.xlane.f32.xlu1 %v391_v24 }
 0x19f   :  { %v384_v25 = vpop.xlane.xlu0 %383 }
 0x1a0   :  { %v394_v26 = vsub.f32 %v149_v13, %v384_v25 }
 0x1a2   :  { %v398_v27 = vmul.f32 1.442695, %v394_v26 }
 0x1a3   :  { %v387_v28 = vpop.xlane.xlu0 %386  ;;  %v390_v29 = vpop.xlane.xlu1 %389 }
 0x1a4   :  { %742 = vpow2.f32 %v398_v27  ;;  %v395_v30 = vsub.f32 %v225_v14, %v387_v28  ;;  %v396_v31 = vsub.f32 %v301_v19, %v390_v29 }
 0x1a6   :  { %v400_v32 = vmul.f32 1.442695, %v395_v30  ;;  %v402_v33 = vmul.f32 1.442695, %v396_v31 }
 0x1a7   :  { %v393_v34 = vpop.xlane.xlu1 %392 }
 0x1a8   :  { %744 = vpow2.f32 %v400_v32  ;;  %v397_v35 = vsub.f32 %v377_v22, %v393_v34 }
 0x1a9   :  { %746 = vpow2.f32 %v402_v33 }
 0x1aa   :  { %v404_v36 = vmul.f32 1.442695, %v397_v35 }
 0x1ac   :  { %748 = vpow2.f32 %v404_v36 }
 0x1ae   :  { %v743_v37 = vpop.eup %742 }
 0x1af   :  { %v406_v38 = vsel %vm381_vm2, %v743_v37, 0.0 }
 0x1b0   :  { %407 = vadd.xlane.f32.xlu0 %v406_v38 }
 0x1b2   :  { %v745_v39 = vpop.eup %744 }
 0x1b3   :  { %v747_v40 = vpop.eup %746  ;;  %v409_v41 = vsel %vm381_vm2, %v745_v39, 0.0 }
 0x1b4   :  { %410 = vadd.xlane.f32.xlu1 %v409_v41  ;;  %v412_v42 = vsel %vm381_vm2, %v747_v40, 0.0 }
 0x1b5   :  { %413 = vadd.xlane.f32.xlu0 %v412_v42 }
 0x1b6   :  { %v749_v43 = vpop.eup %748 }
 0x1b7   :  { %v415_v44 = vsel %vm381_vm2, %v749_v43, 0.0 }
 0x1b8   :  { %416 = vadd.xlane.f32.xlu1 %v415_v44 }
 0x23d   :  { %v408_v51 = vpop.xlane.xlu0 %407 }
 0x23e   :  { %750 = vrcp.f32 %v408_v51 }
 0x241   :  { %v411_v52 = vpop.xlane.xlu1 %410 }
 0x242   :  { %v414_v53 = vpop.xlane.xlu0 %413  ;;  %752 = vrcp.f32 %v411_v52 }
 0x243   :  { %754 = vrcp.f32 %v414_v53 }
 0x245   :  { %v417_v55 = vpop.xlane.xlu1 %416 }
 0x246   :  { %756 = vrcp.f32 %v417_v55 }
 0x248   :  { %v751_v57 = vpop.eup %750 }
 0x249   :  { %v422_v59 = vmul.f32 %v751_v57, %v743_v37 }
 0x24b   :  { %619 = vst.msk [vmem:[#allocation9] sm:$0xff] %vm381_vm2, %v422_v59  ;;  %v426_v60 = vpack.c.bf16 %v422_v59, %v422_v59 }
 0x24c   :  { %v753_v63 = vpop.eup %752 }
 0x24d   :  { %v755_v1 = vpop.eup %754  ;;  %v423_v2 = vmul.f32 %v753_v63, %v745_v39  ;;  %712 = vmatmul.mubr.msk.bf16.vlgmr.msra.gmra.mrb[4].mxu0 %vm381_vm2, %v426_v60 }
 0x24e   :  { %v424_v3 = vmul.f32 %v755_v1, %v747_v40  ;;  %722 = vmatpush3.bf16.msra.mxu0 %v531_v61  ;;  %723 = vmatprep.mubr.msk.bf16.mxu0 %vm882_vm0, %v881_v0 }
 0x24f   :  { %620 = vst.msk [vmem:[#allocation9 + $0x8] sm:$0xff] %vm381_vm2, %v423_v2  ;;  %v427_v4 = vpack.c.bf16 %v423_v2, %v423_v2 }
 0x250   :  { %v757_v6 = vpop.eup %756  ;;  %621 = vst.msk [vmem:[#allocation9 + $0x10] sm:$0xff] %vm381_vm2, %v424_v3  ;;  %v428_v8 = vpack.c.bf16 %v424_v3, %v424_v3 }
 0x251   :  { %v425_v7 = vmul.f32 %v757_v6, %v749_v43  ;;  %718 = vmatmul.mubr.msk.bf16.vlgmr.msra.gmra.mrb[4].mxu1 %vm381_vm2, %v427_v4 }
 0x252   :  { %728 = vmatpush3.bf16.msra.mxu1 %v577_v5  ;;  %729 = vmatprep.mubr.msk.bf16.mxu1 %vm882_vm0, %v881_v0 }
 0x253   :  { %622 = vst.msk [vmem:[#allocation9 + $0x18] sm:$0xff] %vm381_vm2, %v425_v7  ;;  %v429_v9 = vpack.c.bf16 %v425_v7, %v425_v7 }
 0x255   :  { %724 = vmatmul.mubr.msk.bf16.vlgmr.msra.gmra.mrb[8].mxu0 %vm381_vm2, %v428_v8 }
 0x259   :  { %730 = vmatmul.mubr.msk.bf16.vlgmr.msra.gmra.mrb[8].mxu1 %vm381_vm2, %v429_v9 }
 0x25a   :  { %835 = shalt.err (!%p832_p0)
}
 0x25b   :  { %s836_s5 = scalar_lea.hbm %s1052_s4, 512 }
 0x25c   :  { %p837_p1 = scmp.ne.s32.totalorder %s1052_s4, %s836_s5  ;;  %p840_p2 = scmp.lt.u32.totalorder %s836_s5, %s1052_s4 }
 0x25e   :  { %p842_p3 = pnand %p840_p2, %p837_p1 }
 0x260   :  { %845 = shalt.err (!%p842_p3)
}
 0x261   :  { %650 = dma.vmem_to_hbm [thread:$0]  %s645_s25, 512, %s1052_s4, [#allocation10], %s878_s27, %s878_s27, %s879_s28  }
 0x262   :  { %s884_s12 = smov [#allocation8]  }
 0x263   :  { %s632_s1 = sshll.u32 %s884_s12, 4  ;;  %s633_s1 = int_to_ptr.vmem [resolvable:$true] %s632_s1 }
 0x264   :  { %s846_s4 = scalar_lea.vmem %s633_s1, 512  ;;  %p851_p5 = scmp.lt.s32.totalorder %s633_s1, %s633_s1 }
 0x265   :  { %p847_p4 = scmp.ne.s32.totalorder %s633_s1, %s846_s4  ;;  %p852_p6 = scmp.lt.s32.totalorder %s846_s4, %s846_s4 }
 0x267   :  { %p853_p7 = por %p852_p6, %p851_p5 }
 0x269   :  { %p854_p8 = pnand %p853_p7, %p847_p4 }
 0x320   :  { %v475_v0 = vpop.f32.mrb[4].mxu0 }
 0x321   :  { %623 = vst.msk [vmem:[#allocation8] sm:$0xff] %vm76_vm1, %v475_v0  ;;  %v713_v10 = vpop.f32.mrb[5].mxu0 }
 0x322   :  { %v478_v11 = vpop.f32.mrb[6].mxu0 }
 0x323   :  { %v714_v12 = vpop.f32.mrb[7].mxu0 }
 0x324   :  { %v521_v13 = vpop.f32.mrb[4].mxu1 }
 0x325   :  { %624 = vst.msk [vmem:[#allocation8 + $0x8] sm:$0xff] %vm76_vm1, %v521_v13  ;;  %v719_v14 = vpop.f32.mrb[5].mxu1 }
 0x326   :  { %v524_v15 = vpop.f32.mrb[6].mxu1 }
 0x327   :  { %v720_v16 = vpop.f32.mrb[7].mxu1 }
 0x328   :  { %v567_v17 = vpop.f32.mrb[8].mxu0 }
 0x329   :  { %625 = vst.msk [vmem:[#allocation8 + $0x10] sm:$0xff] %vm76_vm1, %v567_v17  ;;  %v725_v18 = vpop.f32.mrb[9].mxu0 }
 0x32a   :  { %v570_v19 = vpop.f32.mrb[10].mxu0 }
 0x32b   :  { %v726_v20 = vpop.f32.mrb[11].mxu0 }
 0x32c   :  { %v613_v21 = vpop.f32.mrb[8].mxu1 }
 0x32d   :  { %626 = vst.msk [vmem:[#allocation8 + $0x18] sm:$0xff] %vm76_vm1, %v613_v21  ;;  %v731_v22 = vpop.f32.mrb[9].mxu1 }
 0x32e   :  { %v616_v23 = vpop.f32.mrb[10].mxu1 }
 0x32f   :  { %857 = shalt.err (!%p854_p8)
}
 0x330   :  { %s858_s15 = scalar_lea.hbm %s1051_s3, 512 }
 0x331   :  { %p859_p9 = scmp.ne.s32.totalorder %s1051_s3, %s858_s15  ;;  %p862_p10 = scmp.lt.u32.totalorder %s858_s15, %s1051_s3 }
 0x333   :  { %p864_p11 = pnand %p862_p10, %p859_p9 }
 0x335   :  { %867 = shalt.err (!%p864_p11)
}
 0x336   :  { %638 = dma.vmem_to_hbm [thread:$0]  %s633_s1, 512, %s1051_s3, [#allocation4], %s878_s27, %s878_s27, %s879_s28   ;;  %v732_v24 = vpop.f32.mrb[11].mxu1 }
 0x337   :  { %872 = dma.done.wait [#allocation4], 512  }
 0x338   :  { %873 = vsyncadd [#allocation4], 4294966784 }
 0x339   :  { %874 = dma.done.wait [#allocation10], 512  }
 0x33a   :  { %875 = vsyncadd [#allocation10], 4294966784 }
 0x33b   :  { %657 = vsyncpa [#allocation3], 1 }
 0x33c   :  { %658 = vsyncpa [#allocation6], 1 }
 0x33d   :  { %659 = vsyncpa [#allocation4], 1 }
 0x33e   :  { %660 = vsyncpa [#allocation10], 1 }

</bundles_post_ra>
